<compile_context>
chip_gen: v5e
topology: v5e:2x2
jax: 0.10.0
libtpu: 0.0.40
codegen_flags: <defaults>
</compile_context>

<pallas_src>
import math
import numpy as np
import jax
import jax.numpy as jnp
from jax.experimental import pallas as pl
from jax.experimental.pallas import tpu as pltpu


# ----------------------------------------------------------------------------
# Deterministic parameter construction (mirrors torchaudio internals)
# ----------------------------------------------------------------------------
def hann_window(n_fft):
    # torch.hann_window(periodic=True)
    n = np.arange(n_fft)
    return (0.5 - 0.5 * np.cos(2.0 * np.pi * n / n_fft)).astype(np.float32)


def rdft_matrices(n_fft):
    # real DFT basis: re[k] = sum_n x[n] cos(2*pi*k*n/N), im[k] = -sum_n x[n] sin(...)
    # (sign of the sin part is irrelevant: only its square is used)
    n_freqs = n_fft // 2 + 1
    n = np.arange(n_fft)[:, None]
    k = np.arange(n_freqs)[None, :]
    ang = 2.0 * np.pi * n * k / n_fft
    return np.cos(ang).astype(np.float32), np.sin(ang).astype(np.float32)


def melscale_fbanks(n_freqs, f_min, f_max, n_mels, sample_rate):
    # torchaudio.functional.melscale_fbanks, mel_scale='htk', norm=None
    all_freqs = np.linspace(0.0, sample_rate // 2, n_freqs)
    m_min = 2595.0 * np.log10(1.0 + f_min / 700.0)
    m_max = 2595.0 * np.log10(1.0 + f_max / 700.0)
    m_pts = np.linspace(m_min, m_max, n_mels + 2)
    f_pts = 700.0 * (10.0 ** (m_pts / 2595.0) - 1.0)
    f_diff = f_pts[1:] - f_pts[:-1]
    slopes = f_pts[None, :] - all_freqs[:, None]              # (n_freqs, n_mels+2)
    down = -slopes[:, :-2] / f_diff[:-1]
    up = slopes[:, 2:] / f_diff[1:]
    return np.maximum(0.0, np.minimum(down, up)).astype(np.float32)   # (n_freqs, n_mels)


def create_dct(n_mfcc, n_mels):
    # torchaudio.functional.create_dct(norm='ortho') -> (n_mels, n_mfcc)
    n = np.arange(n_mels)[None, :]
    k = np.arange(n_mfcc)[:, None]
    dct = np.cos(np.pi / n_mels * (n + 0.5) * k)              # (n_mfcc, n_mels)
    dct[0] *= 1.0 / math.sqrt(2.0)
    dct *= math.sqrt(2.0 / n_mels)
    return dct.T.astype(np.float32)


# ----------------------------------------------------------------------------
# Batch-tile choice (amortize grid overhead, fill MXU M-dim, keep >=2 tiles)
# ----------------------------------------------------------------------------
def _choose_batch_tile(B, T, padded_len):
    rows_target = 1024                                    # target MXU M rows per step
    bytes_cap = 4 << 20                                   # per input tile (double-buffered)
    tb = max(1, rows_target // max(T, 1))
    tb = min(tb, max(1, bytes_cap // (4 * padded_len)), B)
    num_tiles = -(-B // tb)
    if B >= 2 and num_tiles < 2:
        num_tiles = 2                                     # keep both v7x TensorCores busy
    tb = -(-B // num_tiles)
    num_tiles = -(-B // tb)
    return tb, num_tiles


# ----------------------------------------------------------------------------
# Pallas kernel: one batch tile (TB items, all T frames) per grid step
# ----------------------------------------------------------------------------
def _make_mfcc_kernel(TB, T, hop, n_fft, n_mels, n_mfcc, top_db, amin):
    def kernel(pad_ref, c_ref, fb2_ref, dct_ref, out_ref, xbuf_ref):
        # pad_ref : (1, TB, padded_len)   c_ref  : (n_fft, 2*n_freqs)
        # fb2_ref : (2*n_freqs, n_mels)   dct_ref: (n_mels, n_mfcc)
        # out_ref : (1, T, TB, n_mfcc)    xbuf_ref: (T*TB, n_fft) VMEM scratch
        padw = pad_ref[0]                                             # (TB, padded_len)

        # frame-major frame matrix: rows [t*TB:(t+1)*TB] = frame t of all TB items
        for t in range(T):
            xbuf_ref[t * TB:(t + 1) * TB, :] = padw[:, t * hop:t * hop + n_fft]

        # fused windowed rDFT -> power -> mel: two MXU matmuls around a square
        spec = jnp.dot(xbuf_ref[...], c_ref[...],
                       preferred_element_type=jnp.float32)            # (T*TB, 2*n_freqs)
        mel = jnp.dot(spec * spec, fb2_ref[...],
                      preferred_element_type=jnp.float32)             # (T*TB, n_mels)

        # AmplitudeToDB('power'): 10*log10(clamp(x, amin)); db_multiplier = 0
        db = 10.0 * jnp.log10(jnp.maximum(mel, amin))

        # per-batch-item top_db floor: max over (T, n_mels) for each item
        rmax = jnp.max(db, axis=1, keepdims=True)                     # (T*TB, 1)
        item_max = rmax[0:TB, :]
        for t in range(1, T):
            item_max = jnp.maximum(item_max, rmax[t * TB:(t + 1) * TB, :])
        floor = item_max - top_db                                     # (TB, 1)
        # TODO(synk): torchaudio's amplitude_to_DB on a 3-D (B, mel, T) tensor uses a
        # single global max over the whole batch for this floor; the per-item clamp is
        # kept (as in the reviewed reference) so batch tiles remain independent.

        # clamp + DCT-II (ortho) + store, one frame slab (TB rows) at a time
        dct = dct_ref[...]
        for t in range(T):
            slab = jnp.maximum(db[t * TB:(t + 1) * TB, :], floor)     # (TB, n_mels)
            out_ref[0, t] = jnp.dot(slab, dct,
                                    preferred_element_type=jnp.float32)  # (TB, n_mfcc)

    return kernel


# ----------------------------------------------------------------------------
# Wrapper
# ----------------------------------------------------------------------------
def mfcc_flat_transform(waveform, *, sample_rate=16000, n_mfcc=8,
                        n_fft=64, hop_length=32, n_mels=32, top_db=80.0):
    """waveform: (B, num_samples) float32 -> (B, n_mfcc * n_frames) float32."""
    B, num_samples = waveform.shape
    n_freqs = n_fft // 2 + 1
    pad = n_fft // 2
    padded_len = num_samples + 2 * pad
    T = 1 + (padded_len - n_fft) // hop_length

    TB, num_tiles = _choose_batch_tile(B, T, padded_len)
    B_pad = TB * num_tiles

    # --- glue: pad batch to a whole number of tiles, center reflect-pad time ---
    wav = waveform
    if B_pad != B:
        wav = jnp.pad(wav, ((0, B_pad - B), (0, 0)))          # zero rows -> finite MFCCs
    padded = jnp.pad(wav, ((0, 0), (pad, pad)), mode="reflect")
    padded = padded.reshape(num_tiles, TB, padded_len)

    # --- fused deterministic "parameters" ---
    win = hann_window(n_fft)
    cos_m, sin_m = rdft_matrices(n_fft)
    C = jnp.asarray(np.concatenate([win[:, None] * cos_m,
                                    win[:, None] * sin_m], axis=1))   # (n_fft, 2*n_freqs)
    fb = melscale_fbanks(n_freqs, 0.0, sample_rate / 2.0, n_mels, sample_rate)
    FB2 = jnp.asarray(np.concatenate([fb, fb], axis=0))               # (2*n_freqs, n_mels)
    dct = jnp.asarray(create_dct(n_mfcc, n_mels))                     # (n_mels, n_mfcc)

    kernel = _make_mfcc_kernel(TB, T, hop_length, n_fft, n_mels, n_mfcc,
                               float(top_db), 1e-10)

    out = pl.pallas_call(
        kernel,
        out_shape=jax.ShapeDtypeStruct((num_tiles, T, TB, n_mfcc), jnp.float32),
        grid=(num_tiles,),
        in_specs=[
            pl.BlockSpec((1, TB, padded_len), lambda g: (g, 0, 0)),
            pl.BlockSpec((n_fft, 2 * n_freqs), lambda g: (0, 0)),
            pl.BlockSpec((2 * n_freqs, n_mels), lambda g: (0, 0)),
            pl.BlockSpec((n_mels, n_mfcc), lambda g: (0, 0)),
        ],
        out_specs=pl.BlockSpec((1, T, TB, n_mfcc), lambda g: (g, 0, 0, 0)),
        scratch_shapes=[pltpu.VMEM((T * TB, n_fft), jnp.float32)],
        compiler_params=pltpu.CompilerParams(
            dimension_semantics=("parallel",)),
    )(padded, C, FB2, dct)

    # --- glue: (num_tiles, T, TB, n_mfcc) -> (B, n_mfcc, T) -> flatten like x.reshape(B, -1)
    out = jnp.transpose(out, (0, 2, 3, 1)).reshape(B_pad, n_mfcc, T)[:B]
    return out.reshape(B, -1)


if __name__ == "__main__":
    key = jax.random.PRNGKey(0)
    B, num_samples = 4, 256
    x = jax.random.normal(key, (B, num_samples), dtype=jnp.float32)

    y = mfcc_flat_transform(x, sample_rate=16000, n_mfcc=8,
                            n_fft=64, hop_length=32, n_mels=32)
    jax.block_until_ready(y)

    n_frames = 1 + num_samples // 32
    assert y.shape == (B, 8 * n_frames), y.shape
    assert bool(jnp.all(jnp.isfinite(y)))
    print("KERNEL_OK")
</pallas_src>

<mosaic_0001>
module attributes {stable_mosaic.version = 11 : i64} {
  func.func @kernel(%arg0: i32, %arg1: memref<1x2x320xf32, #tpu.memory_space<vmem>>, %arg2: memref<64x66xf32, #tpu.memory_space<vmem>>, %arg3: memref<66x32xf32, #tpu.memory_space<vmem>>, %arg4: memref<32x8xf32, #tpu.memory_space<vmem>>, %arg5: memref<1x9x2x8xf32, #tpu.memory_space<vmem>>, %arg6: memref<18x64xf32, #tpu.memory_space<vmem>>) attributes {dimension_semantics = [#tpu.dimension_semantics<parallel>], iteration_bounds = array<i64: 2>, scalar_prefetch = 0 : i64, scratch_operands = 1 : i64, tpu.core_type = #tpu.core_type<tc>, window_params = [{transform_indices = @transform_0, window_bounds = array<i64: 1, 2, 320>}, {pipeline_mode = #tpu.pipeline_mode<synchronous>, transform_indices = @transform_1, window_bounds = array<i64: 64, 66>}, {pipeline_mode = #tpu.pipeline_mode<synchronous>, transform_indices = @transform_2, window_bounds = array<i64: 66, 32>}, {pipeline_mode = #tpu.pipeline_mode<synchronous>, transform_indices = @transform_3, window_bounds = array<i64: 32, 8>}, {transform_indices = @transform_4, window_bounds = array<i64: 1, 9, 2, 8>}]} {
    %c0 = arith.constant 0 : index
    %c0_0 = arith.constant 0 : index
    %c0_1 = arith.constant 0 : index
    %0 = vector.load %arg1[%c0, %c0_0, %c0_1] : memref<1x2x320xf32, #tpu.memory_space<vmem>>, vector<1x2x320xf32>
    %1 = vector.shape_cast %0 : vector<1x2x320xf32> to vector<2x320xf32>
    %2 = vector.extract_strided_slice %1 {offsets = [0, 0], sizes = [2, 64], strides = [1, 1]} : vector<2x320xf32> to vector<2x64xf32>
    %c0_2 = arith.constant 0 : index
    %c0_3 = arith.constant 0 : index
    %3 = vector.load %arg6[%c0_2, %c0_3] : memref<18x64xf32, #tpu.memory_space<vmem>>, vector<2x64xf32>
    tpu.vector_store %arg6[%c0_2, %c0_3], %2 {strides = array<i32>} : memref<18x64xf32, #tpu.memory_space<vmem>>, vector<2x64xf32>,
    %4 = vector.extract_strided_slice %1 {offsets = [0, 32], sizes = [2, 64], strides = [1, 1]} : vector<2x320xf32> to vector<2x64xf32>
    %c2 = arith.constant 2 : index
    %c0_4 = arith.constant 0 : index
    %5 = vector.load %arg6[%c2, %c0_4] : memref<18x64xf32, #tpu.memory_space<vmem>>, vector<2x64xf32>
    tpu.vector_store %arg6[%c2, %c0_4], %4 {strides = array<i32>} : memref<18x64xf32, #tpu.memory_space<vmem>>, vector<2x64xf32>,
    %6 = vector.extract_strided_slice %1 {offsets = [0, 64], sizes = [2, 64], strides = [1, 1]} : vector<2x320xf32> to vector<2x64xf32>
    %c4 = arith.constant 4 : index
    %c0_5 = arith.constant 0 : index
    %7 = vector.load %arg6[%c4, %c0_5] : memref<18x64xf32, #tpu.memory_space<vmem>>, vector<2x64xf32>
    tpu.vector_store %arg6[%c4, %c0_5], %6 {strides = array<i32>} : memref<18x64xf32, #tpu.memory_space<vmem>>, vector<2x64xf32>,
    %8 = vector.extract_strided_slice %1 {offsets = [0, 96], sizes = [2, 64], strides = [1, 1]} : vector<2x320xf32> to vector<2x64xf32>
    %c6 = arith.constant 6 : index
    %c0_6 = arith.constant 0 : index
    %9 = vector.load %arg6[%c6, %c0_6] : memref<18x64xf32, #tpu.memory_space<vmem>>, vector<2x64xf32>
    tpu.vector_store %arg6[%c6, %c0_6], %8 {strides = array<i32>} : memref<18x64xf32, #tpu.memory_space<vmem>>, vector<2x64xf32>,
    %10 = vector.extract_strided_slice %1 {offsets = [0, 128], sizes = [2, 64], strides = [1, 1]} : vector<2x320xf32> to vector<2x64xf32>
    %c8 = arith.constant 8 : index
    %c0_7 = arith.constant 0 : index
    %11 = vector.load %arg6[%c8, %c0_7] : memref<18x64xf32, #tpu.memory_space<vmem>>, vector<2x64xf32>
    tpu.vector_store %arg6[%c8, %c0_7], %10 {strides = array<i32>} : memref<18x64xf32, #tpu.memory_space<vmem>>, vector<2x64xf32>,
    %12 = vector.extract_strided_slice %1 {offsets = [0, 160], sizes = [2, 64], strides = [1, 1]} : vector<2x320xf32> to vector<2x64xf32>
    %c10 = arith.constant 10 : index
    %c0_8 = arith.constant 0 : index
    %13 = vector.load %arg6[%c10, %c0_8] : memref<18x64xf32, #tpu.memory_space<vmem>>, vector<2x64xf32>
    tpu.vector_store %arg6[%c10, %c0_8], %12 {strides = array<i32>} : memref<18x64xf32, #tpu.memory_space<vmem>>, vector<2x64xf32>,
    %14 = vector.extract_strided_slice %1 {offsets = [0, 192], sizes = [2, 64], strides = [1, 1]} : vector<2x320xf32> to vector<2x64xf32>
    %c12 = arith.constant 12 : index
    %c0_9 = arith.constant 0 : index
    %15 = vector.load %arg6[%c12, %c0_9] : memref<18x64xf32, #tpu.memory_space<vmem>>, vector<2x64xf32>
    tpu.vector_store %arg6[%c12, %c0_9], %14 {strides = array<i32>} : memref<18x64xf32, #tpu.memory_space<vmem>>, vector<2x64xf32>,
    %16 = vector.extract_strided_slice %1 {offsets = [0, 224], sizes = [2, 64], strides = [1, 1]} : vector<2x320xf32> to vector<2x64xf32>
    %c14 = arith.constant 14 : index
    %c0_10 = arith.constant 0 : index
    %17 = vector.load %arg6[%c14, %c0_10] : memref<18x64xf32, #tpu.memory_space<vmem>>, vector<2x64xf32>
    tpu.vector_store %arg6[%c14, %c0_10], %16 {strides = array<i32>} : memref<18x64xf32, #tpu.memory_space<vmem>>, vector<2x64xf32>,
    %18 = vector.extract_strided_slice %1 {offsets = [0, 256], sizes = [2, 64], strides = [1, 1]} : vector<2x320xf32> to vector<2x64xf32>
    %c16 = arith.constant 16 : index
    %c0_11 = arith.constant 0 : index
    %19 = vector.load %arg6[%c16, %c0_11] : memref<18x64xf32, #tpu.memory_space<vmem>>, vector<2x64xf32>
    tpu.vector_store %arg6[%c16, %c0_11], %18 {strides = array<i32>} : memref<18x64xf32, #tpu.memory_space<vmem>>, vector<2x64xf32>,
    %c0_12 = arith.constant 0 : index
    %c0_13 = arith.constant 0 : index
    %20 = vector.load %arg6[%c0_12, %c0_13] : memref<18x64xf32, #tpu.memory_space<vmem>>, vector<18x64xf32>
    %c0_14 = arith.constant 0 : index
    %c0_15 = arith.constant 0 : index
    %21 = vector.load %arg2[%c0_14, %c0_15] : memref<64x66xf32, #tpu.memory_space<vmem>>, vector<64x66xf32>
    %cst = arith.constant dense<0.000000e+00> : vector<18x66xf32>
    %22 = tpu.matmul %20, %21, %cst {dimension_numbers = #tpu.dot_dimension_numbers<[1], [0], [0], [1], [0, 0, 1, 1], [], []>} : vector<18x64xf32>, vector<64x66xf32>, vector<18x66xf32> -> vector<18x66xf32>
    %23 = arith.mulf %22, %22 : vector<18x66xf32>
    %c0_16 = arith.constant 0 : index
    %c0_17 = arith.constant 0 : index
    %24 = vector.load %arg3[%c0_16, %c0_17] : memref<66x32xf32, #tpu.memory_space<vmem>>, vector<66x32xf32>
    %cst_18 = arith.constant dense<0.000000e+00> : vector<18x32xf32>
    %25 = tpu.matmul %23, %24, %cst_18 {dimension_numbers = #tpu.dot_dimension_numbers<[1], [0], [0], [1], [0, 0, 1, 1], [], []>} : vector<18x66xf32>, vector<66x32xf32>, vector<18x32xf32> -> vector<18x32xf32>
    %cst_19 = arith.constant 1.000000e-10 : f32
    %26 = vector.broadcast %cst_19 : f32 to vector<18x32xf32>
    %27 = arith.maximumf %25, %26 : vector<18x32xf32>
    %28 = math.log %27 : vector<18x32xf32>
    %cst_20 = arith.constant 0.434294492 : f32
    %29 = vector.broadcast %cst_20 : f32 to vector<18x32xf32>
    %30 = arith.mulf %28, %29 : vector<18x32xf32>
    %cst_21 = arith.constant 1.000000e+01 : f32
    %31 = vector.broadcast %cst_21 : f32 to vector<18x32xf32>
    %32 = arith.mulf %31, %30 : vector<18x32xf32>
    %cst_22 = arith.constant dense<0xFF800000> : vector<18xf32>
    %33 = vector.multi_reduction <maximumf>, %32, %cst_22 [1] : vector<18x32xf32> to vector<18xf32>
    %34 = vector.shape_cast %33 : vector<18xf32> to vector<18x1xf32>
    %35 = vector.extract_strided_slice %34 {offsets = [0, 0], sizes = [2, 1], strides = [1, 1]} : vector<18x1xf32> to vector<2x1xf32>
    %36 = vector.extract_strided_slice %34 {offsets = [2, 0], sizes = [2, 1], strides = [1, 1]} : vector<18x1xf32> to vector<2x1xf32>
    %37 = arith.maximumf %35, %36 : vector<2x1xf32>
    %38 = vector.extract_strided_slice %34 {offsets = [4, 0], sizes = [2, 1], strides = [1, 1]} : vector<18x1xf32> to vector<2x1xf32>
    %39 = arith.maximumf %37, %38 : vector<2x1xf32>
    %40 = vector.extract_strided_slice %34 {offsets = [6, 0], sizes = [2, 1], strides = [1, 1]} : vector<18x1xf32> to vector<2x1xf32>
    %41 = arith.maximumf %39, %40 : vector<2x1xf32>
    %42 = vector.extract_strided_slice %34 {offsets = [8, 0], sizes = [2, 1], strides = [1, 1]} : vector<18x1xf32> to vector<2x1xf32>
    %43 = arith.maximumf %41, %42 : vector<2x1xf32>
    %44 = vector.extract_strided_slice %34 {offsets = [10, 0], sizes = [2, 1], strides = [1, 1]} : vector<18x1xf32> to vector<2x1xf32>
    %45 = arith.maximumf %43, %44 : vector<2x1xf32>
    %46 = vector.extract_strided_slice %34 {offsets = [12, 0], sizes = [2, 1], strides = [1, 1]} : vector<18x1xf32> to vector<2x1xf32>
    %47 = arith.maximumf %45, %46 : vector<2x1xf32>
    %48 = vector.extract_strided_slice %34 {offsets = [14, 0], sizes = [2, 1], strides = [1, 1]} : vector<18x1xf32> to vector<2x1xf32>
    %49 = arith.maximumf %47, %48 : vector<2x1xf32>
    %50 = vector.extract_strided_slice %34 {offsets = [16, 0], sizes = [2, 1], strides = [1, 1]} : vector<18x1xf32> to vector<2x1xf32>
    %51 = arith.maximumf %49, %50 : vector<2x1xf32>
    %cst_23 = arith.constant 8.000000e+01 : f32
    %52 = vector.broadcast %cst_23 : f32 to vector<2x1xf32>
    %53 = arith.subf %51, %52 : vector<2x1xf32>
    %c0_24 = arith.constant 0 : index
    %c0_25 = arith.constant 0 : index
    %54 = vector.load %arg4[%c0_24, %c0_25] : memref<32x8xf32, #tpu.memory_space<vmem>>, vector<32x8xf32>
    %55 = vector.extract_strided_slice %32 {offsets = [0, 0], sizes = [2, 32], strides = [1, 1]} : vector<18x32xf32> to vector<2x32xf32>
    %56 = vector.broadcast %53 : vector<2x1xf32> to vector<2x32xf32>
    %57 = arith.maximumf %55, %56 : vector<2x32xf32>
    %cst_26 = arith.constant dense<0.000000e+00> : vector<2x8xf32>
    %58 = tpu.matmul %57, %54, %cst_26 {dimension_numbers = #tpu.dot_dimension_numbers<[1], [0], [0], [1], [0, 0, 1, 1], [], []>} : vector<2x32xf32>, vector<32x8xf32>, vector<2x8xf32> -> vector<2x8xf32>
    %c0_27 = arith.constant 0 : index
    %c0_28 = arith.constant 0 : index
    %c0_29 = arith.constant 0 : index
    %c0_30 = arith.constant 0 : index
    %59 = vector.load %arg5[%c0_27, %c0_28, %c0_29, %c0_30] : memref<1x9x2x8xf32, #tpu.memory_space<vmem>>, vector<1x1x2x8xf32>
    %60 = vector.shape_cast %59 : vector<1x1x2x8xf32> to vector<2x8xf32>
    %61 = vector.shape_cast %58 : vector<2x8xf32> to vector<1x1x2x8xf32>
    tpu.vector_store %arg5[%c0_27, %c0_28, %c0_29, %c0_30], %61 {strides = array<i32>} : memref<1x9x2x8xf32, #tpu.memory_space<vmem>>, vector<1x1x2x8xf32>,
    %62 = vector.extract_strided_slice %32 {offsets = [2, 0], sizes = [2, 32], strides = [1, 1]} : vector<18x32xf32> to vector<2x32xf32>
    %63 = vector.broadcast %53 : vector<2x1xf32> to vector<2x32xf32>
    %64 = arith.maximumf %62, %63 : vector<2x32xf32>
    %cst_31 = arith.constant dense<0.000000e+00> : vector<2x8xf32>
    %65 = tpu.matmul %64, %54, %cst_31 {dimension_numbers = #tpu.dot_dimension_numbers<[1], [0], [0], [1], [0, 0, 1, 1], [], []>} : vector<2x32xf32>, vector<32x8xf32>, vector<2x8xf32> -> vector<2x8xf32>
    %c0_32 = arith.constant 0 : index
    %c1 = arith.constant 1 : index
    %c0_33 = arith.constant 0 : index
    %c0_34 = arith.constant 0 : index
    %66 = vector.load %arg5[%c0_32, %c1, %c0_33, %c0_34] : memref<1x9x2x8xf32, #tpu.memory_space<vmem>>, vector<1x1x2x8xf32>
    %67 = vector.shape_cast %66 : vector<1x1x2x8xf32> to vector<2x8xf32>
    %68 = vector.shape_cast %65 : vector<2x8xf32> to vector<1x1x2x8xf32>
    tpu.vector_store %arg5[%c0_32, %c1, %c0_33, %c0_34], %68 {strides = array<i32>} : memref<1x9x2x8xf32, #tpu.memory_space<vmem>>, vector<1x1x2x8xf32>,
    %69 = vector.extract_strided_slice %32 {offsets = [4, 0], sizes = [2, 32], strides = [1, 1]} : vector<18x32xf32> to vector<2x32xf32>
    %70 = vector.broadcast %53 : vector<2x1xf32> to vector<2x32xf32>
    %71 = arith.maximumf %69, %70 : vector<2x32xf32>
    %cst_35 = arith.constant dense<0.000000e+00> : vector<2x8xf32>
    %72 = tpu.matmul %71, %54, %cst_35 {dimension_numbers = #tpu.dot_dimension_numbers<[1], [0], [0], [1], [0, 0, 1, 1], [], []>} : vector<2x32xf32>, vector<32x8xf32>, vector<2x8xf32> -> vector<2x8xf32>
    %c0_36 = arith.constant 0 : index
    %c2_37 = arith.constant 2 : index
    %c0_38 = arith.constant 0 : index
    %c0_39 = arith.constant 0 : index
    %73 = vector.load %arg5[%c0_36, %c2_37, %c0_38, %c0_39] : memref<1x9x2x8xf32, #tpu.memory_space<vmem>>, vector<1x1x2x8xf32>
    %74 = vector.shape_cast %73 : vector<1x1x2x8xf32> to vector<2x8xf32>
    %75 = vector.shape_cast %72 : vector<2x8xf32> to vector<1x1x2x8xf32>
    tpu.vector_store %arg5[%c0_36, %c2_37, %c0_38, %c0_39], %75 {strides = array<i32>} : memref<1x9x2x8xf32, #tpu.memory_space<vmem>>, vector<1x1x2x8xf32>,
    %76 = vector.extract_strided_slice %32 {offsets = [6, 0], sizes = [2, 32], strides = [1, 1]} : vector<18x32xf32> to vector<2x32xf32>
    %77 = vector.broadcast %53 : vector<2x1xf32> to vector<2x32xf32>
    %78 = arith.maximumf %76, %77 : vector<2x32xf32>
    %cst_40 = arith.constant dense<0.000000e+00> : vector<2x8xf32>
    %79 = tpu.matmul %78, %54, %cst_40 {dimension_numbers = #tpu.dot_dimension_numbers<[1], [0], [0], [1], [0, 0, 1, 1], [], []>} : vector<2x32xf32>, vector<32x8xf32>, vector<2x8xf32> -> vector<2x8xf32>
    %c0_41 = arith.constant 0 : index
    %c3 = arith.constant 3 : index
    %c0_42 = arith.constant 0 : index
    %c0_43 = arith.constant 0 : index
    %80 = vector.load %arg5[%c0_41, %c3, %c0_42, %c0_43] : memref<1x9x2x8xf32, #tpu.memory_space<vmem>>, vector<1x1x2x8xf32>
    %81 = vector.shape_cast %80 : vector<1x1x2x8xf32> to vector<2x8xf32>
    %82 = vector.shape_cast %79 : vector<2x8xf32> to vector<1x1x2x8xf32>
    tpu.vector_store %arg5[%c0_41, %c3, %c0_42, %c0_43], %82 {strides = array<i32>} : memref<1x9x2x8xf32, #tpu.memory_space<vmem>>, vector<1x1x2x8xf32>,
    %83 = vector.extract_strided_slice %32 {offsets = [8, 0], sizes = [2, 32], strides = [1, 1]} : vector<18x32xf32> to vector<2x32xf32>
    %84 = vector.broadcast %53 : vector<2x1xf32> to vector<2x32xf32>
    %85 = arith.maximumf %83, %84 : vector<2x32xf32>
    %cst_44 = arith.constant dense<0.000000e+00> : vector<2x8xf32>
    %86 = tpu.matmul %85, %54, %cst_44 {dimension_numbers = #tpu.dot_dimension_numbers<[1], [0], [0], [1], [0, 0, 1, 1], [], []>} : vector<2x32xf32>, vector<32x8xf32>, vector<2x8xf32> -> vector<2x8xf32>
    %c0_45 = arith.constant 0 : index
    %c4_46 = arith.constant 4 : index
    %c0_47 = arith.constant 0 : index
    %c0_48 = arith.constant 0 : index
    %87 = vector.load %arg5[%c0_45, %c4_46, %c0_47, %c0_48] : memref<1x9x2x8xf32, #tpu.memory_space<vmem>>, vector<1x1x2x8xf32>
    %88 = vector.shape_cast %87 : vector<1x1x2x8xf32> to vector<2x8xf32>
    %89 = vector.shape_cast %86 : vector<2x8xf32> to vector<1x1x2x8xf32>
    tpu.vector_store %arg5[%c0_45, %c4_46, %c0_47, %c0_48], %89 {strides = array<i32>} : memref<1x9x2x8xf32, #tpu.memory_space<vmem>>, vector<1x1x2x8xf32>,
    %90 = vector.extract_strided_slice %32 {offsets = [10, 0], sizes = [2, 32], strides = [1, 1]} : vector<18x32xf32> to vector<2x32xf32>
    %91 = vector.broadcast %53 : vector<2x1xf32> to vector<2x32xf32>
    %92 = arith.maximumf %90, %91 : vector<2x32xf32>
    %cst_49 = arith.constant dense<0.000000e+00> : vector<2x8xf32>
    %93 = tpu.matmul %92, %54, %cst_49 {dimension_numbers = #tpu.dot_dimension_numbers<[1], [0], [0], [1], [0, 0, 1, 1], [], []>} : vector<2x32xf32>, vector<32x8xf32>, vector<2x8xf32> -> vector<2x8xf32>
    %c0_50 = arith.constant 0 : index
    %c5 = arith.constant 5 : index
    %c0_51 = arith.constant 0 : index
    %c0_52 = arith.constant 0 : index
    %94 = vector.load %arg5[%c0_50, %c5, %c0_51, %c0_52] : memref<1x9x2x8xf32, #tpu.memory_space<vmem>>, vector<1x1x2x8xf32>
    %95 = vector.shape_cast %94 : vector<1x1x2x8xf32> to vector<2x8xf32>
    %96 = vector.shape_cast %93 : vector<2x8xf32> to vector<1x1x2x8xf32>
    tpu.vector_store %arg5[%c0_50, %c5, %c0_51, %c0_52], %96 {strides = array<i32>} : memref<1x9x2x8xf32, #tpu.memory_space<vmem>>, vector<1x1x2x8xf32>,
    %97 = vector.extract_strided_slice %32 {offsets = [12, 0], sizes = [2, 32], strides = [1, 1]} : vector<18x32xf32> to vector<2x32xf32>
    %98 = vector.broadcast %53 : vector<2x1xf32> to vector<2x32xf32>
    %99 = arith.maximumf %97, %98 : vector<2x32xf32>
    %cst_53 = arith.constant dense<0.000000e+00> : vector<2x8xf32>
    %100 = tpu.matmul %99, %54, %cst_53 {dimension_numbers = #tpu.dot_dimension_numbers<[1], [0], [0], [1], [0, 0, 1, 1], [], []>} : vector<2x32xf32>, vector<32x8xf32>, vector<2x8xf32> -> vector<2x8xf32>
    %c0_54 = arith.constant 0 : index
    %c6_55 = arith.constant 6 : index
    %c0_56 = arith.constant 0 : index
    %c0_57 = arith.constant 0 : index
    %101 = vector.load %arg5[%c0_54, %c6_55, %c0_56, %c0_57] : memref<1x9x2x8xf32, #tpu.memory_space<vmem>>, vector<1x1x2x8xf32>
    %102 = vector.shape_cast %101 : vector<1x1x2x8xf32> to vector<2x8xf32>
    %103 = vector.shape_cast %100 : vector<2x8xf32> to vector<1x1x2x8xf32>
    tpu.vector_store %arg5[%c0_54, %c6_55, %c0_56, %c0_57], %103 {strides = array<i32>} : memref<1x9x2x8xf32, #tpu.memory_space<vmem>>, vector<1x1x2x8xf32>,
    %104 = vector.extract_strided_slice %32 {offsets = [14, 0], sizes = [2, 32], strides = [1, 1]} : vector<18x32xf32> to vector<2x32xf32>
    %105 = vector.broadcast %53 : vector<2x1xf32> to vector<2x32xf32>
    %106 = arith.maximumf %104, %105 : vector<2x32xf32>
    %cst_58 = arith.constant dense<0.000000e+00> : vector<2x8xf32>
    %107 = tpu.matmul %106, %54, %cst_58 {dimension_numbers = #tpu.dot_dimension_numbers<[1], [0], [0], [1], [0, 0, 1, 1], [], []>} : vector<2x32xf32>, vector<32x8xf32>, vector<2x8xf32> -> vector<2x8xf32>
    %c0_59 = arith.constant 0 : index
    %c7 = arith.constant 7 : index
    %c0_60 = arith.constant 0 : index
    %c0_61 = arith.constant 0 : index
    %108 = vector.load %arg5[%c0_59, %c7, %c0_60, %c0_61] : memref<1x9x2x8xf32, #tpu.memory_space<vmem>>, vector<1x1x2x8xf32>
    %109 = vector.shape_cast %108 : vector<1x1x2x8xf32> to vector<2x8xf32>
    %110 = vector.shape_cast %107 : vector<2x8xf32> to vector<1x1x2x8xf32>
    tpu.vector_store %arg5[%c0_59, %c7, %c0_60, %c0_61], %110 {strides = array<i32>} : memref<1x9x2x8xf32, #tpu.memory_space<vmem>>, vector<1x1x2x8xf32>,
    %111 = vector.extract_strided_slice %32 {offsets = [16, 0], sizes = [2, 32], strides = [1, 1]} : vector<18x32xf32> to vector<2x32xf32>
    %112 = vector.broadcast %53 : vector<2x1xf32> to vector<2x32xf32>
    %113 = arith.maximumf %111, %112 : vector<2x32xf32>
    %cst_62 = arith.constant dense<0.000000e+00> : vector<2x8xf32>
    %114 = tpu.matmul %113, %54, %cst_62 {dimension_numbers = #tpu.dot_dimension_numbers<[1], [0], [0], [1], [0, 0, 1, 1], [], []>} : vector<2x32xf32>, vector<32x8xf32>, vector<2x8xf32> -> vector<2x8xf32>
    %c0_63 = arith.constant 0 : index
    %c8_64 = arith.constant 8 : index
    %c0_65 = arith.constant 0 : index
    %c0_66 = arith.constant 0 : index
    %115 = vector.load %arg5[%c0_63, %c8_64, %c0_65, %c0_66] : memref<1x9x2x8xf32, #tpu.memory_space<vmem>>, vector<1x1x2x8xf32>
    %116 = vector.shape_cast %115 : vector<1x1x2x8xf32> to vector<2x8xf32>
    %117 = vector.shape_cast %114 : vector<2x8xf32> to vector<1x1x2x8xf32>
    tpu.vector_store %arg5[%c0_63, %c8_64, %c0_65, %c0_66], %117 {strides = array<i32>} : memref<1x9x2x8xf32, #tpu.memory_space<vmem>>, vector<1x1x2x8xf32>,
    return
  }
  func.func @transform_0(%arg0: i32) -> (i32, i32, i32) {
    %c0_i32 = arith.constant 0 : i32
    %c0_i32_0 = arith.constant 0 : i32
    %c0_i32_1 = arith.constant 0 : i32
    return %arg0, %c0_i32, %c0_i32_0 : i32, i32, i32
  }
  func.func @transform_1(%arg0: i32) -> (i32, i32) {
    %c0_i32 = arith.constant 0 : i32
    %c0_i32_0 = arith.constant 0 : i32
    %c0_i32_1 = arith.constant 0 : i32
    return %c0_i32, %c0_i32_0 : i32, i32
  }
  func.func @transform_2(%arg0: i32) -> (i32, i32) {
    %c0_i32 = arith.constant 0 : i32
    %c0_i32_0 = arith.constant 0 : i32
    %c0_i32_1 = arith.constant 0 : i32
    return %c0_i32, %c0_i32_0 : i32, i32
  }
  func.func @transform_3(%arg0: i32) -> (i32, i32) {
    %c0_i32 = arith.constant 0 : i32
    %c0_i32_0 = arith.constant 0 : i32
    %c0_i32_1 = arith.constant 0 : i32
    return %c0_i32, %c0_i32_0 : i32, i32
  }
  func.func @transform_4(%arg0: i32) -> (i32, i32, i32, i32) {
    %c0_i32 = arith.constant 0 : i32
    %c0_i32_0 = arith.constant 0 : i32
    %c0_i32_1 = arith.constant 0 : i32
    %c0_i32_2 = arith.constant 0 : i32
    return %arg0, %c0_i32, %c0_i32_0, %c0_i32_1 : i32, i32, i32, i32
  }
}

</mosaic_0001>

<bundles_post_ra>
// kernel: tpu_custom_call.1
= control target key start
LH: loop header
LB: loop body
LE: loop exit
PB: predicated region body
PF: predicated region fallthrough
CT: control target
= control target key end

     0   :  { %s805_s15 = smov 0   ;;  %s970_s0 = inlined_call_operand.vmem [shape: f32[2,2,320], index: 0, kind: input, shape index: {}]   ;;  %s971_s1 = inlined_call_operand.vmem [shape: f32[64,66], index: 1, kind: input, shape index: {}]   ;;  %s972_s2 = inlined_call_operand.vmem [shape: f32[66,32], index: 2, kind: input, shape index: {}]   ;;  %s973_s3 = inlined_call_operand.vmem [shape: f32[32,8], index: 3, kind: input, shape index: {}]   ;;  %s974_s4 = inlined_call_operand.vmem [shape: f32[2,9,2,8], index: 4, kind: output, shape index: {}]  }
   0x1 LB: > { %s712_s16 = sadd.s32 4294967295, %s774_s15   ;;  %p716_p0 = scmp.ge.s32.totalorder %s774_s15, 1  ;;  %s774_s15 = sphi %s805_s15, %s14_s15  }
   0x2   : > { %p162_p1 = scmp.lt.s32.totalorder %s774_s15, 3 }
   0x4   : > { %p163_p2 = pnand %p716_p0, %p162_p1 }
   0x5   : > { %p188_p3 = scmp.lt.s32.totalorder (!%p163_p2), %s712_s16, 1  ;;  %s776_s21 = smov (!%p163_p2), 96  }
   0x6   : > { %166 = sbr.rel (%p163_p2) target bundleno = 839 (0x347), region = 36  ;;  %s777_s22 = smov (!%p163_p2), 64  }
   0x7   : > { %s778_s23 = smov (!%p163_p2), 32  }
   0xb   : > { %s976_s16 = smov (!%p188_p3, %s712_s16), 1  ;;  %vm199_vm0 = vcmask 517120   ;;  %v265_v10 = vld [vmem:[%s971_s1 + $0x38] sm:$0xff]  ;;  %v264_v11 = vld [vmem:[%s971_s1 + $0x30] sm:$0xff]  ;;  %v263_v12 = vld [vmem:[%s971_s1 + $0x28] sm:$0xff]  ;;  %vm221_vm1 = vcmask 261120  }
   0xc   : > { %s746_s17 = smul.u32 6, %s976_s16  ;;  %284 = vmatpush.msra.mxu0 %v265_v10  ;;  %v262_v13 = vld [vmem:[%s971_s1 + $0x20] sm:$0xff]  ;;  %v261_v14 = vld [vmem:[%s971_s1 + $0x18] sm:$0xff]  ;;  %v260_v15 = vld [vmem:[%s971_s1 + $0x10] sm:$0xff]  ;;  %vm324_vm2 = vcmask 1041408   ;;  %vm266_vm3 = vcmask 523264  }
   0xd   : > { %v259_v16 = vld [vmem:[%s971_s1 + $0x8] sm:$0xff]  ;;  %v258_v18 = vld [vmem:[%s971_s1] sm:$0xff]  ;;  %v312_v26 = vld [vmem:[%s972_s2 + $0x38] sm:$0xff]  ;;  %vm314_vm4 = vcmask 539648   ;;  %vm375_vm5 = vcmask 254976   ;;  %s747_s18 = smul.u32 18, %s976_s16 }
   0xe   : > { %s192_s20 = scalar_lea.vmem %s970_s0, %s746_s17  ;;  %285 = vmatpush.msra.mxu0 %v264_v11  ;;  %v313_v25 = vld [vmem:[%s972_s2 + $0x40] sm:$0x3]  ;;  %v311_v27 = vld [vmem:[%s972_s2 + $0x30] sm:$0xff]  ;;  %v310_v28 = vld [vmem:[%s972_s2 + $0x28] sm:$0xff]  ;;  %vm435_vm6 = vcmask 58368  }
   0xf   : > { %v198_v0 = vld [vmem:[%s192_s20] sm:$0x3f]  ;;  %722 = vmatpush.msk.msra.mxu1 %vm324_vm2, %v313_v25  ;;  %v308_v34 = vld [vmem:[%s972_s2 + $0x18] sm:$0xff]  ;;  %v307_v35 = vld [vmem:[%s972_s2 + $0x10] sm:$0xff] }
  0x10   : > { %202 = vst [vmem:[#allocation1] ss:$4 sm:$0xff] %v198_v0  ;;  %286 = vmatpush.msra.mxu0 %v263_v12  ;;  %v309_v29 = vld [vmem:[%s972_s2 + $0x20] sm:$0xff]  ;;  %v306_v39 = vld [vmem:[%s972_s2 + $0x8] sm:$0xff] }
  0x11   : > { %200 = vst.msk [vmem:[#allocation2] sm:$0x3] %vm199_vm0, %v198_v0  ;;  %336 = vmatpush.msra.mxu1 %v312_v26  ;;  %v305_v40 = vld [vmem:[%s972_s2] sm:$0xff] }
  0x12   : > { %287 = vmatpush.msra.mxu0 %v262_v13  ;;  %v402_v26 = vld [vmem:[%s973_s3] sm:$0xff] }
  0x13   : > { %337 = vmatpush.msra.mxu1 %v311_v27 }
  0x14   : > { %288 = vmatpush.msra.mxu0 %v261_v14 }
  0x15   : > { %338 = vmatpush.msra.mxu1 %v310_v28 }
  0x16   : > { %289 = vmatpush.msra.mxu0 %v260_v15 }
  0x17   : > { %v203_v1 = vld.sshfl [vmem:[#allocation1] sm:$0xff pattern:$0x73625140]  ;;  %339 = vmatpush.msra.mxu1 %v309_v29 }
  0x18   : > { %208 = vst [vmem:[#allocation1] ss:$4 sm:$0xff] %v198_v0  ;;  %204 = vrot.lane.b32.xlu1 %v203_v1, %s776_s21  ;;  %290 = vmatpush.msra.mxu0 %v259_v16 }
  0x19   : > { %340 = vmatpush.msra.mxu1 %v308_v34 }
  0x1a   : > { %291 = vmatpush.msra.mxu0 %v258_v18 }
  0x1b   : > { %341 = vmatpush.msra.mxu1 %v307_v35 }
  0x1d   : > { %342 = vmatpush.msra.mxu1 %v306_v39 }
  0x1f   : > { %v209_v2 = vld.sshfl [vmem:[#allocation1] sm:$0xff pattern:$0x73625140]  ;;  %343 = vmatpush.msra.mxu1 %v305_v40 }
  0x20   : > { %214 = vst [vmem:[#allocation1] ss:$4 sm:$0xff] %v198_v0  ;;  %210 = vrot.lane.b32.xlu1 %v209_v2, %s777_s22 }
  0x27   : > { %v215_v3 = vld.sshfl [vmem:[#allocation1] sm:$0xff pattern:$0x73625140]  ;;  %v216_v4 = vld.sshfl [vmem:[#allocation1 + $0x8] sm:$0xff pattern:$0x73625140] }
  0x28   : > { %217 = vrot.lane.b32.xlu0 %v215_v3, %s778_s23  ;;  %225 = vst [vmem:[#allocation1] ss:$4 sm:$0xff] %v198_v0 }
  0x2f   : > { %v226_v5 = vld.sshfl [vmem:[#allocation1 + $0x8] sm:$0xff pattern:$0x73625140] }
  0x30   : > { %219 = vrot.lane.b32.xlu0 %v216_v4, %s778_s23  ;;  %229 = vst [vmem:[#allocation1] ss:$4 sm:$0xff] %v198_v0  ;;  %v779_v4 = vmov 0  }
  0x31   : > { %228 = vst.msk [vmem:[#allocation2 + $0x8] sm:$0x3] %vm199_vm0, %v226_v5  ;;  %760 = vset.pattern.permute.xlu2 %v779_v4  ;;  %761 = vset.pattern.permute.xlu0 %v779_v4  ;;  %v895_v5 = vld [vmem:[%s973_s3 + $0x18] sm:$0xff] }
  0x32   : > { %427 = vmatpush.msra.mxu2 %v895_v5  ;;  %647 = vmatpush.msrb.mxu0 %v895_v5 }
  0x33   : > { %456 = vmatpush.msra.mxu3 %v895_v5 }
  0x37   : > { %v230_v6 = vld.sshfl [vmem:[#allocation1 + $0x8] sm:$0xff pattern:$0x73625140] }
  0x38   : > { %231 = vrot.lane.b32.xlu0 %v230_v6, %s776_s21  ;;  %235 = vst [vmem:[#allocation1] ss:$4 sm:$0xff] %v198_v0  ;;  %v900_v6 = vld [vmem:[%s973_s3 + $0x10] sm:$0xff]  ;;  %s197_s21 = scalar_lea.vmem %s974_s4, %s747_s18 }
  0x39   : > { %428 = vmatpush.msra.mxu2 %v900_v6  ;;  %648 = vmatpush.msrb.mxu0 %v900_v6 }
  0x3a   : > { %457 = vmatpush.msra.mxu3 %v900_v6 }
  0x3f   : > { %v236_v7 = vld.sshfl [vmem:[#allocation1 + $0x8] sm:$0xff pattern:$0x73625140] }
  0x40   : > { %237 = vrot.lane.b32.xlu1 %v236_v7, %s777_s22  ;;  %241 = vst [vmem:[#allocation1] ss:$4 sm:$0xff] %v198_v0  ;;  %v907_v7 = vld [vmem:[%s973_s3 + $0x8] sm:$0xff] }
  0x41   : > { %429 = vmatpush.msra.mxu2 %v907_v7  ;;  %649 = vmatpush.msrb.mxu0 %v907_v7 }
  0x42   : > { %458 = vmatpush.msra.mxu3 %v907_v7 }
  0x43   : > { %430 = vmatpush.msra.mxu2 %v402_v26  ;;  %650 = vmatpush.msrb.mxu0 %v402_v26 }
  0x44   : > { %459 = vmatpush.msra.mxu3 %v402_v26 }
  0x45   : > { %485 = vmatpush.msrb.mxu2 %v895_v5 }
  0x46   : > { %514 = vmatpush.msrb.mxu3 %v895_v5 }
  0x47   : > { %v242_v8 = vld.sshfl [vmem:[#allocation1 + $0x8] sm:$0xff pattern:$0x73625140]  ;;  %v243_v9 = vld.sshfl [vmem:[#allocation1 + $0x10] sm:$0xff pattern:$0x73625140]  ;;  %486 = vmatpush.msrb.mxu2 %v900_v6 }
  0x48   : > { %244 = vrot.lane.b32.xlu2 %v242_v8, %s778_s23  ;;  %251 = vst [vmem:[#allocation1] ss:$4 sm:$0xff] %v198_v0  ;;  %515 = vmatpush.msrb.mxu3 %v900_v6 }
  0x49   : > { %487 = vmatpush.msrb.mxu2 %v907_v7 }
  0x4a   : > { %516 = vmatpush.msrb.mxu3 %v907_v7 }
  0x4b   : > { %488 = vmatpush.msrb.mxu2 %v402_v26 }
  0x4c   : > { %517 = vmatpush.msrb.mxu3 %v402_v26 }
  0x4f   : > { %v252_v21 = vld.sshfl [vmem:[#allocation1 + $0x10] sm:$0xff pattern:$0x73625140] }
  0x50   : > { %246 = vrot.lane.b32.xlu2 %v243_v9, %s778_s23  ;;  %254 = vst.msk [vmem:[#allocation2 + $0x10] sm:$0x3] %vm199_vm0, %v252_v21 }
  0x57   : > { %v257_v38 = vld [vmem:[#allocation2 + $0x10] sm:$0x3] }
  0x8a   : > { %v205_v17 = vpop.permute.xlu1 %204 }
  0x8b   : > { %207 = vst.msk [vmem:[#allocation2 + $0x2] sm:$0x3] %vm199_vm0, %v205_v17 }
  0x92   : > { %v211_v19 = vpop.permute.xlu1 %210 }
  0x93   : > { %213 = vst.msk [vmem:[#allocation2 + $0x4] sm:$0x3] %vm199_vm0, %v211_v19 }
  0x9a   : > { %v218_v20 = vpop.permute.xlu0 %217 }
  0xa2   : > { %v220_v22 = vpop.permute.xlu0 %219  ;;  %v245_v23 = vpop.permute.xlu2 %244 }
  0xa3   : > { %v222_v24 = vsel %vm221_vm1, %v218_v20, %v220_v22 }
  0xa4   : > { %224 = vst.msk [vmem:[#allocation2 + $0x6] sm:$0x3] %vm199_vm0, %v222_v24 }
  0xaa   : > { %v247_v30 = vpop.permute.xlu2 %246  ;;  %v232_v31 = vpop.permute.xlu0 %231 }
  0xab   : > { %v248_v32 = vsel %vm221_vm1, %v245_v23, %v247_v30  ;;  %v255_v33 = vld [vmem:[#allocation2] sm:$0xff]  ;;  %234 = vst.msk [vmem:[#allocation2 + $0xa] sm:$0x3] %vm199_vm0, %v232_v31 }
  0xac   : > { %250 = vst.msk [vmem:[#allocation2 + $0xe] sm:$0x3] %vm199_vm0, %v248_v32  ;;  %719 = vmatmul.msk.f32.vlgmr.msra.gmra.mxu0 %vm266_vm3, %v255_v33 }
  0xb2   : > { %v238_v36 = vpop.permute.xlu1 %237 }
  0xb3   : > { %240 = vst.msk [vmem:[#allocation2 + $0xc] sm:$0x3] %vm199_vm0, %v238_v36 }
  0xba   : > { %v256_v37 = vld [vmem:[#allocation2 + $0x8] sm:$0xff] }
  0xbb   : > { %720 = vmatmul.msk.f32.gmra.mxu0 %vm266_vm3, %v256_v37 }
  0xc3   : > { %721 = vmatmul.msk.f32.gmra.mxu0 %vm266_vm3, %v257_v38 }
 0x129   : > { %v293_v41 = vpop.f32.mrf.mxu0 }
 0x12a   : > { %v302_v42 = vmul.f32 %v293_v41, %v293_v41 }
 0x12c   : > { %723 = vmatmul.msk.f32.vlgmr.msra.gmra.mxu1 %vm314_vm4, %v302_v42 }
 0x138   : > { %v296_v43 = vpop.f32.mrf.mxu0 }
 0x139   : > { %v303_v44 = vmul.f32 %v296_v43, %v296_v43 }
 0x13b   : > { %724 = vmatmul.msk.f32.gmra.mxu1 %vm314_vm4, %v303_v44 }
 0x140   : > { %v299_v45 = vpop.f32.mrf.mxu0 }
 0x141   : > { %v304_v46 = vmul.f32 %v299_v45, %v299_v45 }
 0x143   : > { %725 = vmatmul.msk.f32.gmra.mxu1 %vm314_vm4, %v304_v46 }
 0x1a9   : > { %v345_v47 = vpop.f32.mrf.mxu1 }
 0x1aa   : > { %v354_v48 = vmax.f32 %v345_v47, 1e-10 }
 0x1ac   : > { %762 = vlog2.f32 %v354_v48 }
 0x1b2   : > { %v763_v49 = vpop.eup %762 }
 0x1b3   : > { %v358_v50 = vmul.f32 0.6931472, %v763_v49 }
 0x1b5   : > { %v363_v51 = vmul.f32 0.4342945, %v358_v50 }
 0x1b7   : > { %v884_v52 = vmul.f32 10.0, %v363_v51 }
 0x1b8   : > { %v348_v53 = vpop.f32.mrf.mxu1 }
 0x1b9   : > { %v355_v54 = vmax.f32 %v348_v53, 1e-10  ;;  %v369_v55 = vsel %vm221_vm1, %v884_v52, -inf }
 0x1ba   : > { %370 = vmax.xlane.f32.xlu2 %v369_v55 }
 0x1bb   : > { %764 = vlog2.f32 %v355_v54 }
 0x1c0   : > { %v351_v56 = vpop.f32.mrf.mxu1 }
 0x1c1   : > { %v765_v57 = vpop.eup %764  ;;  %v356_v58 = vmax.f32 %v351_v56, 1e-10 }
 0x1c2   : > { %v360_v59 = vmul.f32 0.6931472, %v765_v57 }
 0x1c3   : > { %766 = vlog2.f32 %v356_v58 }
 0x1c4   : > { %v364_v60 = vmul.f32 0.4342945, %v360_v59 }
 0x1c6   : > { %v888_v61 = vmul.f32 10.0, %v364_v60 }
 0x1c8   : > { %v372_v62 = vsel %vm221_vm1, %v888_v61, -inf }
 0x1c9   : > { %v767_v63 = vpop.eup %766  ;;  %373 = vmax.xlane.f32.xlu0 %v372_v62 }
 0x1ca   : > { %v362_v0 = vmul.f32 0.6931472, %v767_v63 }
 0x1cc   : > { %v365_v1 = vmul.f32 0.4342945, %v362_v0 }
 0x1ce   : > { %v368_v2 = vmul.f32 10.0, %v365_v1 }
 0x1d0   : > { %v376_v3 = vsel %vm375_vm5, %v368_v2, -inf }
 0x1d1   : > { %377 = vmax.xlane.f32.xlu1 %v376_v3 }
 0x22d   : > { %v371_v8 = vpop.xlane.xlu2 %370 }
 0x22e   : > { %v380_v9 = vrot.slane %v371_v8, 2  ;;  %v383_v11 = vrot.slane %v371_v8, 4  ;;  %v386_v13 = vrot.slane %v371_v8, 6 }
 0x230   : > { %v382_v10 = vmax.f32 %v371_v8, %v380_v9 }
 0x232   : > { %v385_v12 = vmax.f32 %v382_v10, %v383_v11 }
 0x234   : > { %v388_v14 = vmax.f32 %v385_v12, %v386_v13 }
 0x23c   : > { %v374_v15 = vpop.xlane.xlu0 %373 }
 0x23d   : > { %v389_v16 = vmax.f32 %v388_v14, %v374_v15  ;;  %v391_v17 = vrot.slane %v374_v15, 2  ;;  %v394_v19 = vrot.slane %v374_v15, 4  ;;  %v397_v20 = vrot.slane %v374_v15, 6 }
 0x23f   : > { %v393_v18 = vmax.f32 %v389_v16, %v391_v17 }
 0x241   : > { %v396_v21 = vmax.f32 %v393_v18, %v394_v19 }
 0x243   : > { %v399_v22 = vmax.f32 %v396_v21, %v397_v20 }
 0x244   : > { %v378_v23 = vpop.xlane.xlu1 %377 }
 0x245   : > { %v400_v24 = vmax.f32 %v399_v22, %v378_v23 }
 0x247   : > { %v726_v25 = vadd.f32 -80.0, %v400_v24 }
 0x249   : > { %408 = vperm.xlu2 %760, %v726_v25  }
 0x2a3   : > { %v409_v27 = vpop.permute.xlu2 %408 }
 0x2a4   : > { %v466_v28 = vrot.slane %v409_v27, 4  ;;  %v411_v29 = vmax.f32 %v884_v52, %v409_v27  ;;  %v631_v30 = vmax.f32 %v368_v2, %v409_v27  ;;  %v437_v31 = vrot.slane %v409_v27, 6 }
 0x2a5   : > { %v495_v34 = vrot.slane %v409_v27, 2  ;;  %v524_v39 = vmax.f32 %v888_v61, %v409_v27 }
 0x2a6   : > { %727 = vmatmul.msk.f32.vlgmr.msra.gmra.mxu2 %vm221_vm1, %v411_v29  ;;  %742 = vmatmul.msk.f32.vlgmr.msrb.gmra.mxu0 %vm221_vm1, %v631_v30  ;;  %v439_v32 = vmax.f32 %v884_v52, %v437_v31  ;;  %v468_v33 = vmax.f32 %v884_v52, %v466_v28  ;;  %v550_v40 = vmax.f32 %v888_v61, %v437_v31 }
 0x2a7   : > { %540 = vmatpush.msra.mxu2 %v895_v5  ;;  %v497_v37 = vmax.f32 %v884_v52, %v495_v34  ;;  %v577_v41 = vmax.f32 %v888_v61, %v466_v28  ;;  %v604_v44 = vmax.f32 %v888_v61, %v495_v34 }
 0x2a8   : > { %v441_v35 = vrot.slane %v439_v32, 2  ;;  %v470_v36 = vrot.slane %v468_v33, 4  ;;  %v552_v42 = vrot.slane %v550_v40, 2 }
 0x2a9   : > { %541 = vmatpush.msra.mxu2 %v900_v6  ;;  %v499_v38 = vrot.slane %v497_v37, 6  ;;  %v579_v43 = vrot.slane %v577_v41, 4  ;;  %v606_v45 = vrot.slane %v604_v44, 6 }
 0x2aa   : > { %728 = vmatmul.msk.f32.vlgmr.msra.gmra.mxu3 %vm221_vm1, %v441_v35 }
 0x2ab   : > { %542 = vmatpush.msra.mxu2 %v907_v7  ;;  %567 = vmatpush.msra.mxu3 %v895_v5 }
 0x2ad   : > { %543 = vmatpush.msra.mxu2 %v402_v26  ;;  %568 = vmatpush.msra.mxu3 %v900_v6 }
 0x2ae   : > { %730 = vmatmul.msk.f32.vlgmr.msrb.gmra.mxu2 %vm221_vm1, %v470_v36 }
 0x2af   : > { %594 = vmatpush.msrb.mxu2 %v895_v5  ;;  %569 = vmatpush.msra.mxu3 %v907_v7 }
 0x2b1   : > { %595 = vmatpush.msrb.mxu2 %v900_v6  ;;  %570 = vmatpush.msra.mxu3 %v402_v26 }
 0x2b2   : > { %732 = vmatmul.msk.f32.vlgmr.msrb.gmra.mxu3 %vm221_vm1, %v499_v38 }
 0x2b3   : > { %596 = vmatpush.msrb.mxu2 %v907_v7  ;;  %621 = vmatpush.msrb.mxu3 %v895_v5 }
 0x2b5   : > { %597 = vmatpush.msrb.mxu2 %v402_v26  ;;  %622 = vmatpush.msrb.mxu3 %v900_v6 }
 0x2b6   : > { %734 = vmatmul.msk.f32.vlgmr.msra.gmra.mxu2 %vm221_vm1, %v524_v39 }
 0x2b7   : > { %623 = vmatpush.msrb.mxu3 %v907_v7 }
 0x2b9   : > { %624 = vmatpush.msrb.mxu3 %v402_v26 }
 0x2ba   : > { %736 = vmatmul.msk.f32.vlgmr.msra.gmra.mxu3 %vm221_vm1, %v552_v42 }
 0x2be   : > { %738 = vmatmul.msk.f32.vlgmr.msrb.gmra.mxu2 %vm221_vm1, %v579_v43 }
 0x2c2   : > { %740 = vmatmul.msk.f32.vlgmr.msrb.gmra.mxu3 %vm221_vm1, %v606_v45 }
 0x323   : > { %v652_v46 = vpop.f32.mrf.mxu0 }
 0x324   : > { %743 = vst.msk [vmem:[%s197_s21 + $0x10] sm:$0x3] %vm435_vm6, %v652_v46 }
 0x329   : > { %v432_v47 = vpop.f32.mrf.mxu2 }
 0x32a   : > { %436 = vst.msk [vmem:[%s197_s21] sm:$0x3] %vm435_vm6, %v432_v47 }
 0x32d   : > { %v461_v48 = vpop.f32.mrf.mxu3 }
 0x32e   : > { %729 = vst.msk [vmem:[%s197_s21 + $0x2] sm:$0x3] %vm435_vm6, %v461_v48 }
 0x331   : > { %v490_v49 = vpop.f32.mrf.mxu2 }
 0x332   : > { %731 = vst.msk [vmem:[%s197_s21 + $0x4] sm:$0x3] %vm435_vm6, %v490_v49 }
 0x335   : > { %v519_v50 = vpop.f32.mrf.mxu3 }
 0x336   : > { %733 = vst.msk [vmem:[%s197_s21 + $0x6] sm:$0x3] %vm435_vm6, %v519_v50 }
 0x339   : > { %v545_v51 = vpop.f32.mrf.mxu2 }
 0x33a   : > { %735 = vst.msk [vmem:[%s197_s21 + $0x8] sm:$0x3] %vm435_vm6, %v545_v51 }
 0x33d   : > { %v572_v52 = vpop.f32.mrf.mxu3 }
 0x33e   : > { %737 = vst.msk [vmem:[%s197_s21 + $0xa] sm:$0x3] %vm435_vm6, %v572_v52 }
 0x341   : > { %v599_v53 = vpop.f32.mrf.mxu2 }
 0x342   : > { %739 = vst.msk [vmem:[%s197_s21 + $0xc] sm:$0x3] %vm435_vm6, %v599_v53 }
 0x345   : > { %v626_v54 = vpop.f32.mrf.mxu3 }
 0x346   : > { %741 = vst.msk [vmem:[%s197_s21 + $0xe] sm:$0x3] %vm435_vm6, %v626_v54 }
 0x347 PF: > { %s14_s15 = sadd.s32 1, %s774_s15  }
 0x348   : > { %p11_p4 = scmp.ge.s32.totalorder %s14_s15, 4  }
 0x34a   :  { %13 = sbr.rel (!%p11_p4) target bundleno = 1 (0x1), region = 74 }

</bundles_post_ra>
